<compile_context>
chip_gen: v5e
topology: v5e:2x2
jax: 0.10.0
libtpu: 0.0.40
codegen_flags: <defaults>
</compile_context>

<pallas_src>
import functools

import jax
import jax.numpy as jnp
from jax.experimental import pallas as pl
from jax.experimental.pallas import tpu as pltpu

_LANE = 128
_CHUNK_ROWS = 1024              # compute-chunk rows inside each DMA block
_TILE_BYTES_BUDGET = 4 << 20    # ~4 MiB per input block (per perf review)


def _round_up(x, m):
    return ((x + m - 1) // m) * m


def _num_tensorcores():
    """Best-effort count of TensorCores one Pallas grid can span (megacore
    v4/v5p, 2-TC v7x). Defaults to 1; correctness never depends on this."""
    try:
        kind = jax.devices()[0].device_kind.lower()
    except Exception:
        return 1
    if ("v4" in kind) or ("v5p" in kind) or ("v7" in kind):
        return 2
    return 1


def _mse_partial_kernel(x_ref, t_ref, acc_ref, *,
                        row_tile, chunk_rows, blocks_per_shard,
                        valid_rows, needs_mask):
    """Accumulates per-lane partial sums of (x - t)^2 into a resident
    (1, 8, 128) f32 VMEM output block (one block per shard).

    The (row_tile, 128) DMA block is processed in chunk_rows-row chunks so
    intermediates stay small; rows whose global index >= valid_rows (ragged
    tail / clamped duplicate blocks) are masked out."""
    i = pl.program_id(1)

    @pl.when(i == 0)
    def _():
        acc_ref[...] = jnp.zeros_like(acc_ref)

    # Logical (unclamped) first row of this block.
    block_row0 = (pl.program_id(0) * blocks_per_shard + i) * row_tile
    n_chunks = row_tile // chunk_rows

    def body(j, acc):
        r0 = pl.multiple_of(j * chunk_rows, chunk_rows)
        xv = x_ref[pl.ds(r0, chunk_rows), :].astype(jnp.float32)
        tv = t_ref[pl.ds(r0, chunk_rows), :].astype(jnp.float32)
        d = xv - tv
        sq = d * d
        if needs_mask:
            rid = jax.lax.broadcasted_iota(jnp.int32, (chunk_rows, _LANE), 0)
            gid = rid + (block_row0 + r0)
            sq = jnp.where(gid < valid_rows, sq, 0.0)
        # Fold (chunk_rows, 128) -> (8, 128): pure vreg-wise VPU adds; the one
        # cross-lane reduce happens once in the JAX wrapper.
        return acc + jnp.sum(sq.reshape(chunk_rows // 8, 8, _LANE), axis=0)

    part = jax.lax.fori_loop(0, n_chunks, body,
                             jnp.zeros((8, _LANE), jnp.float32))
    acc_ref[...] += part[None, :, :]


def content_loss_forward(x, target):
    """ContentLoss.forward: returns (input, mse_loss(input, target))."""
    assert x.shape == target.shape, "input/target shape mismatch"
    total_n = x.size
    itemsize = jnp.dtype(x.dtype).itemsize
    sublane_align = 8 if itemsize >= 4 else 16

    rows = -(-total_n // _LANE)           # ceil(total_n / 128)
    lane_rem = total_n % _LANE

    xf = x.reshape(-1)
    tf = target.reshape(-1)
    if lane_rem:
        # Rare fallback: element count not divisible by 128 -> pad <=127 zeros
        # so the (rows, 128) view exists (zero terms contribute 0; divide uses
        # the true element count). 128-divisible sizes take the zero-copy path.
        pad = _LANE - lane_rem
        xf = jnp.pad(xf, (0, pad))
        tf = jnp.pad(tf, (0, pad))
    x2 = xf.reshape(rows, _LANE)
    t2 = tf.reshape(rows, _LANE)

    # Shard the reduction across TensorCores only on multi-TC parts and only
    # when there is enough work per shard.
    num_shards = _num_tensorcores()
    if rows < num_shards * _CHUNK_ROWS:
        num_shards = 1

    max_budget_rows = max(_TILE_BYTES_BUDGET // (_LANE * itemsize),
                          sublane_align)
    rows_per_shard = -(-rows // num_shards)
    row_tile = min(max_budget_rows, _round_up(rows_per_shard, sublane_align))
    chunk_rows = min(row_tile, _CHUNK_ROWS)
    row_tile = _round_up(row_tile, chunk_rows)        # clean inner chunk loop
    blocks_per_shard = -(-rows_per_shard // row_tile)

    grid_blocks = num_shards * blocks_per_shard
    real_blocks = -(-rows // row_tile)
    last_block = real_blocks - 1
    needs_mask = (grid_blocks * row_tile) != rows

    if grid_blocks > real_blocks:
        # Grid over-covers at block granularity (e.g. odd block count split
        # across 2 shards): clamp onto the last real block so no DMA goes out
        # of bounds; the duplicate block's rows are fully masked in-kernel.
        def in_idx(c, i):
            return (jnp.minimum(c * blocks_per_shard + i, last_block), 0)
    else:
        def in_idx(c, i):
            return (c * blocks_per_shard + i, 0)

    kernel = functools.partial(
        _mse_partial_kernel,
        row_tile=row_tile,
        chunk_rows=chunk_rows,
        blocks_per_shard=blocks_per_shard,
        valid_rows=rows,
        needs_mask=needs_mask,
    )

    # 2 inputs x 2 pipeline buffers x tile + accumulator + chunk intermediates.
    tile_bytes = row_tile * _LANE * itemsize
    vmem_limit = int(max(4 * tile_bytes + (8 << 20), 16 << 20))

    partials = pl.pallas_call(
        kernel,
        out_shape=jax.ShapeDtypeStruct((num_shards, 8, _LANE), jnp.float32),
        grid_spec=pltpu.PrefetchScalarGridSpec(
            num_scalar_prefetch=0,
            grid=(num_shards, blocks_per_shard),
            in_specs=[
                pl.BlockSpec((row_tile, _LANE), in_idx),
                pl.BlockSpec((row_tile, _LANE), in_idx),
            ],
            out_specs=pl.BlockSpec((1, 8, _LANE), lambda c, i: (c, 0, 0)),
        ),
        compiler_params=pltpu.CompilerParams(
            dimension_semantics=("parallel", "arbitrary"),
            vmem_limit_bytes=vmem_limit,
        ),
        cost_estimate=pl.CostEstimate(
            flops=3 * total_n,
            transcendentals=0,
            bytes_accessed=2 * total_n * itemsize,
        ),
    )(x2, t2)

    loss = jnp.sum(partials) / jnp.float32(total_n)
    # forward() returns the input unchanged; it never enters the kernel
    # (keeps HBM traffic at the minimal 2N bytes read).
    return x, loss


if __name__ == "__main__":
    key = jax.random.PRNGKey(0)
    k1, k2, k3, k4 = jax.random.split(key, 4)

    # Primary case: batch=2, channels=4, spatial=16x16 (lane-aligned path).
    x = jax.random.normal(k1, (2, 4, 16, 16), dtype=jnp.float32)
    target = jax.random.normal(k2, (2, 4, 16, 16), dtype=jnp.float32)
    out, loss = jax.block_until_ready(content_loss_forward(x, target))
    ref_loss = jnp.mean((x - target) ** 2)
    assert jnp.allclose(out, x), "pass-through output mismatch"
    assert jnp.allclose(loss, ref_loss, rtol=1e-6, atol=1e-6), "loss mismatch"

    # Ragged-rows case (rows not a multiple of the sublane tile -> in-kernel
    # mask path, no wrapper padding): 1*5*24*16 = 1920 = 15 * 128 elements.
    xr = jax.random.normal(k3, (1, 5, 24, 16), dtype=jnp.float32)
    tr = jax.random.normal(k4, (1, 5, 24, 16), dtype=jnp.float32)
    outr, lossr = jax.block_until_ready(content_loss_forward(xr, tr))
    refr = jnp.mean((xr - tr) ** 2)
    assert jnp.allclose(outr, xr), "pass-through output mismatch (ragged)"
    assert jnp.allclose(lossr, refr, rtol=1e-6, atol=1e-6), "loss mismatch (ragged)"

    print("KERNEL_OK")
</pallas_src>

<mosaic_0001>
module attributes {stable_mosaic.version = 11 : i64} {
  func.func @_mse_partial_kernel(%arg0: i32, %arg1: i32, %arg2: memref<16x128xf32, #tpu.memory_space<vmem>>, %arg3: memref<16x128xf32, #tpu.memory_space<vmem>>, %arg4: memref<1x8x128xf32, #tpu.memory_space<vmem>>) attributes {dimension_semantics = [#tpu.dimension_semantics<parallel>, #tpu.dimension_semantics<arbitrary>], iteration_bounds = array<i64: 1, 1>, scalar_prefetch = 0 : i64, scratch_operands = 0 : i64, tpu.core_type = #tpu.core_type<tc>, window_params = [{transform_indices = @transform_0, window_bounds = array<i64: 16, 128>}, {transform_indices = @transform_1, window_bounds = array<i64: 16, 128>}, {transform_indices = @transform_2, window_bounds = array<i64: 1, 8, 128>}]} {
    %c0_i32 = arith.constant 0 : i32
    %0 = arith.cmpi eq, %arg1, %c0_i32 : i32
    %1 = arith.extui %0 : i1 to i32
    %c0_i32_0 = arith.constant 0 : i32
    %2 = arith.cmpi ne, %1, %c0_i32_0 : i32
    scf.if %2 {
      %cst_10 = arith.constant 0.000000e+00 : f32
      %19 = vector.broadcast %cst_10 : f32 to vector<1x8x128xf32>
      %c0_11 = arith.constant 0 : index
      %c0_12 = arith.constant 0 : index
      %c0_13 = arith.constant 0 : index
      %20 = vector.load %arg4[%c0_11, %c0_12, %c0_13] : memref<1x8x128xf32, #tpu.memory_space<vmem>>, vector<1x8x128xf32>
      tpu.vector_store %arg4[%c0_11, %c0_12, %c0_13], %19 {strides = array<i32>} : memref<1x8x128xf32, #tpu.memory_space<vmem>>, vector<1x8x128xf32>,
    } else {
    }
    %cst = arith.constant 0.000000e+00 : f32
    %3 = vector.broadcast %cst : f32 to vector<8x128xf32>
    %c0_i32_1 = arith.constant 0 : i32
    %c16_i32 = arith.constant 16 : i32
    %4 = arith.muli %c0_i32_1, %c16_i32 : i32
    %5 = tpu.assume_multiple %4, 16 : i32
    %6 = arith.index_cast %5 : i32 to index
    %c0 = arith.constant 0 : index
    %7 = vector.load %arg2[%6, %c0] : memref<16x128xf32, #tpu.memory_space<vmem>>, vector<16x128xf32>
    %8 = arith.index_cast %5 : i32 to index
    %c0_2 = arith.constant 0 : index
    %9 = vector.load %arg3[%8, %c0_2] : memref<16x128xf32, #tpu.memory_space<vmem>>, vector<16x128xf32>
    %10 = arith.subf %7, %9 : vector<16x128xf32>
    %11 = arith.mulf %10, %10 : vector<16x128xf32>
    %12 = vector.shape_cast %11 : vector<16x128xf32> to vector<2x8x128xf32>
    %cst_3 = arith.constant dense<0.000000e+00> : vector<8x128xf32>
    %13 = vector.multi_reduction <add>, %12, %cst_3 [0] : vector<2x8x128xf32> to vector<8x128xf32>
    %14 = arith.addf %3, %13 : vector<8x128xf32>
    %c1_i32 = arith.constant 1 : i32
    %c0_4 = arith.constant 0 : index
    %c0_5 = arith.constant 0 : index
    %c0_6 = arith.constant 0 : index
    %15 = vector.load %arg4[%c0_4, %c0_5, %c0_6] : memref<1x8x128xf32, #tpu.memory_space<vmem>>, vector<1x8x128xf32>
    %16 = vector.shape_cast %14 : vector<8x128xf32> to vector<1x8x128xf32>
    %17 = arith.addf %15, %16 : vector<1x8x128xf32>
    %c0_7 = arith.constant 0 : index
    %c0_8 = arith.constant 0 : index
    %c0_9 = arith.constant 0 : index
    %18 = vector.load %arg4[%c0_7, %c0_8, %c0_9] : memref<1x8x128xf32, #tpu.memory_space<vmem>>, vector<1x8x128xf32>
    tpu.vector_store %arg4[%c0_7, %c0_8, %c0_9], %17 {strides = array<i32>} : memref<1x8x128xf32, #tpu.memory_space<vmem>>, vector<1x8x128xf32>,
    return
  }
  func.func @transform_0(%arg0: i32, %arg1: i32) -> (i32, i32) {
    %c1_i32 = arith.constant 1 : i32
    %0 = arith.muli %arg0, %c1_i32 : i32
    %1 = arith.addi %0, %arg1 : i32
    %c0_i32 = arith.constant 0 : i32
    %c0_i32_0 = arith.constant 0 : i32
    return %1, %c0_i32 : i32, i32
  }
  func.func @transform_1(%arg0: i32, %arg1: i32) -> (i32, i32) {
    %c1_i32 = arith.constant 1 : i32
    %0 = arith.muli %arg0, %c1_i32 : i32
    %1 = arith.addi %0, %arg1 : i32
    %c0_i32 = arith.constant 0 : i32
    %c0_i32_0 = arith.constant 0 : i32
    return %1, %c0_i32 : i32, i32
  }
  func.func @transform_2(%arg0: i32, %arg1: i32) -> (i32, i32, i32) {
    %c0_i32 = arith.constant 0 : i32
    %c0_i32_0 = arith.constant 0 : i32
    %c0_i32_1 = arith.constant 0 : i32
    return %arg0, %c0_i32, %c0_i32_0 : i32, i32, i32
  }
}

</mosaic_0001>

<bundles_post_ra>
// kernel: tpu_custom_call.1
= control target key start
LH: loop header
LB: loop body
LE: loop exit
PB: predicated region body
PF: predicated region fallthrough
CT: control target
= control target key end

     0   :  { %7 = vsyncpa [#allocation3], 0  ;;  %s205_s0 = inlined_call_operand.hbm [shape: f32[16,128], index: 0, kind: input, shape index: {}]   ;;  %s206_s1 = inlined_call_operand.hbm [shape: f32[16,128], index: 1, kind: input, shape index: {}]   ;;  %s207_s2 = inlined_call_operand.hbm [shape: f32[1,8,128], index: 2, kind: output, shape index: {}]  }
   0x1   :  { %8 = vsyncpa [#allocation6], 0 }
   0x2   :  { %9 = vsyncpa [#allocation4], 0  ;;  %s18_s11 = sshll.u32 %s205_s0, 4  ;;  %s176_s12 = smov [#allocation2]   ;;  %s19_s11 = int_to_ptr.hbm [resolvable:$true] %s18_s11 }
   0x3   :  { %s20_s13 = sshll.u32 %s176_s12, 4  ;;  %s35_s16 = sshll.u32 %s206_s1, 4  ;;  %s21_s13 = int_to_ptr.vmem [resolvable:$true] %s20_s13  ;;  %s36_s16 = int_to_ptr.hbm [resolvable:$true] %s35_s16 }
   0x4   :  { %s177_s17 = smov 128   ;;  %s178_s18 = smov 8  }
   0x5   :  { %26 = dma.hbm_to_vmem [thread:$0]  %s19_s11, 256, %s21_s13, [#allocation3], %s177_s17, %s177_s17, %s178_s18  }
   0x6   :  { %s179_s19 = smov [#allocation5]  }
   0x7   :  { %s37_s20 = sshll.u32 %s179_s19, 4  ;;  %s38_s20 = int_to_ptr.vmem [resolvable:$true] %s37_s20 }
   0x8   :  { %43 = dma.hbm_to_vmem [thread:$0]  %s36_s16, 256, %s38_s20, [#allocation6], %s177_s17, %s177_s17, %s178_s18  }
   0x9   :  { %170 = dma.done.wait [#allocation3], 256  }
   0xa   :  { %171 = vsyncadd [#allocation3], 4294967040 }
   0xb   :  { %172 = dma.done.wait [#allocation6], 256  }
   0xc   :  { %173 = vsyncadd [#allocation6], 4294967040  ;;  %v61_v0 = vld [vmem:[#allocation2] sm:$0xff]  ;;  %v62_v1 = vld [vmem:[#allocation2 + $0x8] sm:$0xff]  ;;  %s180_s0 = smov [#allocation7]   ;;  %s81_s23 = sshll.u32 %s207_s2, 4  ;;  %s82_s23 = int_to_ptr.hbm [resolvable:$true] %s81_s23 }
   0xd   :  { %v63_v2 = vld [vmem:[#allocation5] sm:$0xff]  ;;  %v64_v3 = vld [vmem:[#allocation5 + $0x8] sm:$0xff]  ;;  %s79_s1 = sshll.u32 %s180_s0, 4  ;;  %s80_s1 = int_to_ptr.vmem [resolvable:$true] %s79_s1 }
   0xe   :  { %v65_v4 = vsub.f32 %v61_v0, %v63_v2  ;;  %v66_v5 = vsub.f32 %v62_v1, %v64_v3 }
  0x10   :  { %v67_v6 = vmul.f32 %v65_v4, %v65_v4  ;;  %v68_v7 = vmul.f32 %v66_v5, %v66_v5 }
  0x12   :  { %v69_v8 = vadd.f32 %v68_v7, %v67_v6 }
  0x14   :  { %73 = vst [vmem:[#allocation7] sm:$0xff] %v69_v8 }
  0x15   :  { %84 = dma.vmem_to_hbm [thread:$0]  %s80_s1, 128, %s82_s23, [#allocation4]  }
  0x16   :  { %174 = dma.done.wait [#allocation4], 128  }
  0x17   :  { %175 = vsyncadd [#allocation4], 4294967168 }
  0x18   :  { %89 = vsyncpa [#allocation3], 1 }
  0x19   :  { %90 = vsyncpa [#allocation6], 1 }
  0x1a   :  { %91 = vsyncpa [#allocation4], 1 }

</bundles_post_ra>
